<compile_context>
chip_gen: v5e
topology: v5e:2x2
jax: 0.10.0
libtpu: 0.0.40
codegen_flags: <defaults>
</compile_context>

<pallas_src>
import jax
import jax.numpy as jnp
from jax.experimental import pallas as pl
from jax.experimental.pallas import tpu as pltpu

_EPS = 1e-5
_LANE_QUANTUM = 128                    # lane width of a vreg
_MAX_LANE_TILE = 2048                  # >=512 target to amortize grid-step cost
_TILE_BYTE_BUDGET = 4 * 1024 * 1024    # per input tile (double-buffered)
_VMEM_LIMIT = 32 * 1024 * 1024


# ----------------------------- kernels ------------------------------------ #

def _reduce_kernel(x_ref, sum_ref, sq_ref):
    """Accumulate per-channel sum and sum-of-squares over one (bn, C, bhw) tile.

    Output blocks are per-batch-tile partials (1, C, 1); they stay resident in
    VMEM across the inner (HW) reduction axis and are re-initialized whenever
    the batch-tile index advances (fresh output block).
    """
    @pl.when(pl.program_id(1) == 0)
    def _():
        sum_ref[...] = jnp.zeros_like(sum_ref)
        sq_ref[...] = jnp.zeros_like(sq_ref)

    x = x_ref[...].astype(jnp.float32)              # (bn, C, bhw)
    s = jnp.sum(x, axis=2, keepdims=True)           # (bn, C, 1) lane reduce (XLU)
    q = jnp.sum(x * x, axis=2, keepdims=True)       # (bn, C, 1)
    sum_ref[...] += jnp.sum(s, axis=0, keepdims=True)   # (1, C, 1)
    sq_ref[...] += jnp.sum(q, axis=0, keepdims=True)    # (1, C, 1)


def _normalize_kernel(x_ref, scale_ref, shift_ref, o_ref):
    """out = x * scale_c + shift_c  (scale/shift fold mean, inv_std, gamma, beta)."""
    x = x_ref[...].astype(jnp.float32)              # (bn, C, bhw)
    scale = scale_ref[...][None, :, :]              # (1, C, 1)
    shift = shift_ref[...][None, :, :]              # (1, C, 1)
    o_ref[...] = (x * scale + shift).astype(o_ref.dtype)


# --------------------------- tile selection -------------------------------- #

def _pick_lane_tile(hw):
    """Largest divisor of hw that is a multiple of 128 and <= _MAX_LANE_TILE.

    Falls back to the full extent (always a legal block dim) when hw is not a
    multiple of 128.
    """
    if hw % _LANE_QUANTUM != 0:
        return hw
    best = _LANE_QUANTUM
    cand = _LANE_QUANTUM
    limit = min(hw, _MAX_LANE_TILE)
    while cand <= limit:
        if hw % cand == 0:
            best = cand
        cand += _LANE_QUANTUM
    return best


def _pick_batch_tile(n, c, bhw, itemsize):
    """Largest divisor of n keeping the input tile under the VMEM byte budget."""
    best = 1
    for bn in range(1, n + 1):
        if n % bn == 0 and bn * c * bhw * itemsize <= _TILE_BYTE_BUDGET:
            best = bn
    return best


# ------------------------------ wrapper ------------------------------------ #

def batchlayer_forward(x_nchw, gamma, beta, *, eps=_EPS):
    """x_nchw: (N, C, H, W); gamma/beta: (1, C, 1, 1) -> (N, C, H, W)."""
    N, C, H, W = x_nchw.shape
    HW = H * W

    # Free contiguous reshape -- no HBM transpose round-trips.
    x3 = x_nchw.reshape(N, C, HW)

    bhw = _pick_lane_tile(HW)
    bn = _pick_batch_tile(N, C, bhw, x3.dtype.itemsize)
    grid = (N // bn, HW // bhw)

    # ---------- Pass 1: per-channel sum / sum-of-squares (partials). ----------
    psum, psq = pl.pallas_call(
        _reduce_kernel,
        out_shape=(
            jax.ShapeDtypeStruct((grid[0], C, 1), jnp.float32),
            jax.ShapeDtypeStruct((grid[0], C, 1), jnp.float32),
        ),
        grid_spec=pltpu.PrefetchScalarGridSpec(
            num_scalar_prefetch=0,
            grid=grid,
            in_specs=[pl.BlockSpec((bn, C, bhw), lambda i, j: (i, 0, j))],
            out_specs=(
                pl.BlockSpec((1, C, 1), lambda i, j: (i, 0, 0)),
                pl.BlockSpec((1, C, 1), lambda i, j: (i, 0, 0)),
            ),
        ),
        compiler_params=pltpu.CompilerParams(
            dimension_semantics=("parallel", "arbitrary"),
            vmem_limit_bytes=_VMEM_LIMIT),
    )(x3)

    # ---------- Tiny per-channel finalization in plain JAX (C values). --------
    inv_nhw = 1.0 / float(N * HW)
    sum_c = jnp.sum(psum, axis=0)                       # (C, 1)
    sq_c = jnp.sum(psq, axis=0)                         # (C, 1)
    mean = sum_c * inv_nhw
    var = jnp.maximum(sq_c * inv_nhw - mean * mean, 0.0)   # guard cancellation
    inv_std = 1.0 / (jnp.sqrt(var) + eps)               # eps OUTSIDE sqrt (matches ref)
    scale = gamma.reshape(C, 1).astype(jnp.float32) * inv_std
    shift = beta.reshape(C, 1).astype(jnp.float32) - mean * scale

    # ---------- Pass 2: fully-parallel lane-dense scale + shift. --------------
    y3 = pl.pallas_call(
        _normalize_kernel,
        out_shape=jax.ShapeDtypeStruct((N, C, HW), x_nchw.dtype),
        grid_spec=pltpu.PrefetchScalarGridSpec(
            num_scalar_prefetch=0,
            grid=grid,
            in_specs=[
                pl.BlockSpec((bn, C, bhw), lambda i, j: (i, 0, j)),
                pl.BlockSpec((C, 1), lambda i, j: (0, 0)),
                pl.BlockSpec((C, 1), lambda i, j: (0, 0)),
            ],
            out_specs=pl.BlockSpec((bn, C, bhw), lambda i, j: (i, 0, j)),
        ),
        compiler_params=pltpu.CompilerParams(
            dimension_semantics=("parallel", "parallel"),
            vmem_limit_bytes=_VMEM_LIMIT),
    )(x3, scale, shift)

    return y3.reshape(N, C, H, W)


# ----------------------------- reference ----------------------------------- #

def _reference_forward(x, gamma, beta):
    """Pure-JAX reference mirroring the PyTorch module."""
    mean = jnp.mean(x, axis=(0, 2, 3), keepdims=True)
    centered = x - mean
    var = jnp.mean(centered * centered, axis=(0, 2, 3), keepdims=True)
    data = centered / (jnp.sqrt(var) + _EPS)
    return data * gamma + beta


if __name__ == "__main__":
    key = jax.random.PRNGKey(0)
    kx, kg, kb = jax.random.split(key, 3)

    N, C, H, W = 2, 4, 16, 16
    x = jax.random.normal(kx, (N, C, H, W), dtype=jnp.float32)

    # Deterministic parameter init, matching uniform_(-0.1, 0.1), shapes (1, C, 1, 1)
    gamma = jax.random.uniform(kg, (1, C, 1, 1), jnp.float32, -0.1, 0.1)
    beta = jax.random.uniform(kb, (1, C, 1, 1), jnp.float32, -0.1, 0.1)

    fwd = jax.jit(batchlayer_forward)
    out = jax.block_until_ready(fwd(x, gamma, beta))

    ref = _reference_forward(x, gamma, beta)
    assert out.shape == (N, C, H, W)
    assert jnp.allclose(out, ref, atol=1e-5, rtol=1e-5), "mismatch vs reference"

    print("KERNEL_OK")
</pallas_src>

<mosaic_0001>
module attributes {stable_mosaic.version = 11 : i64} {
  func.func @_reduce_kernel(%arg0: i32, %arg1: i32, %arg2: memref<2x4x256xf32, #tpu.memory_space<vmem>>, %arg3: memref<1x4x1xf32, #tpu.memory_space<vmem>>, %arg4: memref<1x4x1xf32, #tpu.memory_space<vmem>>) attributes {dimension_semantics = [#tpu.dimension_semantics<parallel>, #tpu.dimension_semantics<arbitrary>], iteration_bounds = array<i64: 1, 1>, scalar_prefetch = 0 : i64, scratch_operands = 0 : i64, tpu.core_type = #tpu.core_type<tc>, window_params = [{transform_indices = @transform_0, window_bounds = array<i64: 2, 4, 256>}, {transform_indices = @transform_1, window_bounds = array<i64: 1, 4, 1>}, {transform_indices = @transform_2, window_bounds = array<i64: 1, 4, 1>}]} {
    %c0_i32 = arith.constant 0 : i32
    %0 = arith.cmpi eq, %arg1, %c0_i32 : i32
    %1 = arith.extui %0 : i1 to i32
    %c0_i32_0 = arith.constant 0 : i32
    %2 = arith.cmpi ne, %1, %c0_i32_0 : i32
    scf.if %2 {
      %cst_18 = arith.constant 0.000000e+00 : f32
      %19 = vector.broadcast %cst_18 : f32 to vector<1x4x1xf32>
      %c0_19 = arith.constant 0 : index
      %c0_20 = arith.constant 0 : index
      %c0_21 = arith.constant 0 : index
      %20 = vector.load %arg3[%c0_19, %c0_20, %c0_21] : memref<1x4x1xf32, #tpu.memory_space<vmem>>, vector<1x4x1xf32>
      tpu.vector_store %arg3[%c0_19, %c0_20, %c0_21], %19 {strides = array<i32>} : memref<1x4x1xf32, #tpu.memory_space<vmem>>, vector<1x4x1xf32>,
      %cst_22 = arith.constant 0.000000e+00 : f32
      %21 = vector.broadcast %cst_22 : f32 to vector<1x4x1xf32>
      %c0_23 = arith.constant 0 : index
      %c0_24 = arith.constant 0 : index
      %c0_25 = arith.constant 0 : index
      %22 = vector.load %arg4[%c0_23, %c0_24, %c0_25] : memref<1x4x1xf32, #tpu.memory_space<vmem>>, vector<1x4x1xf32>
      tpu.vector_store %arg4[%c0_23, %c0_24, %c0_25], %21 {strides = array<i32>} : memref<1x4x1xf32, #tpu.memory_space<vmem>>, vector<1x4x1xf32>,
    } else {
    }
    %c0 = arith.constant 0 : index
    %c0_1 = arith.constant 0 : index
    %c0_2 = arith.constant 0 : index
    %3 = vector.load %arg2[%c0, %c0_1, %c0_2] : memref<2x4x256xf32, #tpu.memory_space<vmem>>, vector<2x4x256xf32>
    %cst = arith.constant dense<0.000000e+00> : vector<2x4xf32>
    %4 = vector.multi_reduction <add>, %3, %cst [2] : vector<2x4x256xf32> to vector<2x4xf32>
    %5 = vector.shape_cast %4 : vector<2x4xf32> to vector<2x4x1xf32>
    %6 = arith.mulf %3, %3 : vector<2x4x256xf32>
    %cst_3 = arith.constant dense<0.000000e+00> : vector<2x4xf32>
    %7 = vector.multi_reduction <add>, %6, %cst_3 [2] : vector<2x4x256xf32> to vector<2x4xf32>
    %8 = vector.shape_cast %7 : vector<2x4xf32> to vector<2x4x1xf32>
    %c0_4 = arith.constant 0 : index
    %c0_5 = arith.constant 0 : index
    %c0_6 = arith.constant 0 : index
    %9 = vector.load %arg3[%c0_4, %c0_5, %c0_6] : memref<1x4x1xf32, #tpu.memory_space<vmem>>, vector<1x4x1xf32>
    %cst_7 = arith.constant dense<0.000000e+00> : vector<4x1xf32>
    %10 = vector.multi_reduction <add>, %5, %cst_7 [0] : vector<2x4x1xf32> to vector<4x1xf32>
    %11 = vector.shape_cast %10 : vector<4x1xf32> to vector<1x4x1xf32>
    %12 = arith.addf %9, %11 : vector<1x4x1xf32>
    %c0_8 = arith.constant 0 : index
    %c0_9 = arith.constant 0 : index
    %c0_10 = arith.constant 0 : index
    %13 = vector.load %arg3[%c0_8, %c0_9, %c0_10] : memref<1x4x1xf32, #tpu.memory_space<vmem>>, vector<1x4x1xf32>
    tpu.vector_store %arg3[%c0_8, %c0_9, %c0_10], %12 {strides = array<i32>} : memref<1x4x1xf32, #tpu.memory_space<vmem>>, vector<1x4x1xf32>,
    %c0_11 = arith.constant 0 : index
    %c0_12 = arith.constant 0 : index
    %c0_13 = arith.constant 0 : index
    %14 = vector.load %arg4[%c0_11, %c0_12, %c0_13] : memref<1x4x1xf32, #tpu.memory_space<vmem>>, vector<1x4x1xf32>
    %cst_14 = arith.constant dense<0.000000e+00> : vector<4x1xf32>
    %15 = vector.multi_reduction <add>, %8, %cst_14 [0] : vector<2x4x1xf32> to vector<4x1xf32>
    %16 = vector.shape_cast %15 : vector<4x1xf32> to vector<1x4x1xf32>
    %17 = arith.addf %14, %16 : vector<1x4x1xf32>
    %c0_15 = arith.constant 0 : index
    %c0_16 = arith.constant 0 : index
    %c0_17 = arith.constant 0 : index
    %18 = vector.load %arg4[%c0_15, %c0_16, %c0_17] : memref<1x4x1xf32, #tpu.memory_space<vmem>>, vector<1x4x1xf32>
    tpu.vector_store %arg4[%c0_15, %c0_16, %c0_17], %17 {strides = array<i32>} : memref<1x4x1xf32, #tpu.memory_space<vmem>>, vector<1x4x1xf32>,
    return
  }
  func.func @transform_0(%arg0: i32, %arg1: i32) -> (i32, i32, i32) {
    %c0_i32 = arith.constant 0 : i32
    %c0_i32_0 = arith.constant 0 : i32
    return %arg0, %c0_i32, %arg1 : i32, i32, i32
  }
  func.func @transform_1(%arg0: i32, %arg1: i32) -> (i32, i32, i32) {
    %c0_i32 = arith.constant 0 : i32
    %c0_i32_0 = arith.constant 0 : i32
    %c0_i32_1 = arith.constant 0 : i32
    return %arg0, %c0_i32, %c0_i32_0 : i32, i32, i32
  }
  func.func @transform_2(%arg0: i32, %arg1: i32) -> (i32, i32, i32) {
    %c0_i32 = arith.constant 0 : i32
    %c0_i32_0 = arith.constant 0 : i32
    %c0_i32_1 = arith.constant 0 : i32
    return %arg0, %c0_i32, %c0_i32_0 : i32, i32, i32
  }
}

module attributes {stable_mosaic.version = 11 : i64} {
  func.func @_normalize_kernel(%arg0: i32, %arg1: i32, %arg2: memref<2x4x256xf32, #tpu.memory_space<vmem>>, %arg3: memref<4x1xf32, #tpu.memory_space<vmem>>, %arg4: memref<4x1xf32, #tpu.memory_space<vmem>>, %arg5: memref<2x4x256xf32, #tpu.memory_space<vmem>>) attributes {dimension_semantics = [#tpu.dimension_semantics<parallel>, #tpu.dimension_semantics<parallel>], iteration_bounds = array<i64: 1, 1>, scalar_prefetch = 0 : i64, scratch_operands = 0 : i64, tpu.core_type = #tpu.core_type<tc>, window_params = [{transform_indices = @transform_0, window_bounds = array<i64: 2, 4, 256>}, {pipeline_mode = #tpu.pipeline_mode<synchronous>, transform_indices = @transform_1, window_bounds = array<i64: 4, 1>}, {pipeline_mode = #tpu.pipeline_mode<synchronous>, transform_indices = @transform_2, window_bounds = array<i64: 4, 1>}, {transform_indices = @transform_3, window_bounds = array<i64: 2, 4, 256>}]} {
    %c0 = arith.constant 0 : index
    %c0_0 = arith.constant 0 : index
    %c0_1 = arith.constant 0 : index
    %0 = vector.load %arg2[%c0, %c0_0, %c0_1] : memref<2x4x256xf32, #tpu.memory_space<vmem>>, vector<2x4x256xf32>
    %c0_2 = arith.constant 0 : index
    %c0_3 = arith.constant 0 : index
    %1 = vector.load %arg3[%c0_2, %c0_3] : memref<4x1xf32, #tpu.memory_space<vmem>>, vector<4x1xf32>
    %2 = vector.shape_cast %1 : vector<4x1xf32> to vector<1x4x1xf32>
    %c0_4 = arith.constant 0 : index
    %c0_5 = arith.constant 0 : index
    %3 = vector.load %arg4[%c0_4, %c0_5] : memref<4x1xf32, #tpu.memory_space<vmem>>, vector<4x1xf32>
    %4 = vector.shape_cast %3 : vector<4x1xf32> to vector<1x4x1xf32>
    %5 = vector.broadcast %2 : vector<1x4x1xf32> to vector<2x4x256xf32>
    %6 = arith.mulf %0, %5 : vector<2x4x256xf32>
    %7 = vector.broadcast %4 : vector<1x4x1xf32> to vector<2x4x256xf32>
    %8 = arith.addf %6, %7 : vector<2x4x256xf32>
    %c0_6 = arith.constant 0 : index
    %c0_7 = arith.constant 0 : index
    %c0_8 = arith.constant 0 : index
    %9 = vector.load %arg5[%c0_6, %c0_7, %c0_8] : memref<2x4x256xf32, #tpu.memory_space<vmem>>, vector<2x4x256xf32>
    tpu.vector_store %arg5[%c0_6, %c0_7, %c0_8], %8 {strides = array<i32>} : memref<2x4x256xf32, #tpu.memory_space<vmem>>, vector<2x4x256xf32>,
    return
  }
  func.func @transform_0(%arg0: i32, %arg1: i32) -> (i32, i32, i32) {
    %c0_i32 = arith.constant 0 : i32
    %c0_i32_0 = arith.constant 0 : i32
    return %arg0, %c0_i32, %arg1 : i32, i32, i32
  }
  func.func @transform_1(%arg0: i32, %arg1: i32) -> (i32, i32) {
    %c0_i32 = arith.constant 0 : i32
    %c0_i32_0 = arith.constant 0 : i32
    %c0_i32_1 = arith.constant 0 : i32
    return %c0_i32, %c0_i32_0 : i32, i32
  }
  func.func @transform_2(%arg0: i32, %arg1: i32) -> (i32, i32) {
    %c0_i32 = arith.constant 0 : i32
    %c0_i32_0 = arith.constant 0 : i32
    %c0_i32_1 = arith.constant 0 : i32
    return %c0_i32, %c0_i32_0 : i32, i32
  }
  func.func @transform_3(%arg0: i32, %arg1: i32) -> (i32, i32, i32) {
    %c0_i32 = arith.constant 0 : i32
    %c0_i32_0 = arith.constant 0 : i32
    return %arg0, %c0_i32, %arg1 : i32, i32, i32
  }
}

</mosaic_0001>

<bundles_post_ra>
// kernel: batchlayer_forward.2
= control target key start
LH: loop header
LB: loop body
LE: loop exit
PB: predicated region body
PF: predicated region fallthrough
CT: control target
= control target key end

     0   :  { %vm32_vm0 = vcmask 1043456   ;;  %vm14_vm1 = vcmask 3072   ;;  %v90_v24 = vmov 0.0   ;;  %s146_s0 = inlined_call_operand.vmem [shape: f32[2,4,256], index: 0, kind: input, shape index: {}]   ;;  %s147_s1 = inlined_call_operand.vmem [shape: f32[1,4,1], index: 1, kind: output, shape index: {0}]   ;;  %s148_s2 = inlined_call_operand.vmem [shape: f32[1,4,1], index: 2, kind: output, shape index: {1}]  }
   0x1   :  { %v17_v0 = vld [vmem:[%s146_s0] sm:$0xff]  ;;  %v18_v1 = vld [vmem:[%s146_s0 + $0x8] sm:$0xff]  ;;  %15 = vst.msk [vmem:[%s147_s1] sm:$0xf] %vm14_vm1, %v90_v24 }
   0x2   :  { %21 = vst [vmem:[#allocation1] ss:$2 sm:$0xff] %v17_v0  ;;  %v43_v2 = vmul.f32 %v17_v0, %v17_v0  ;;  %v44_v3 = vmul.f32 %v18_v1, %v18_v1 }
   0x3   :  { %25 = vst [vmem:[#allocation1 + $0x10] ss:$2 sm:$0xff] %v18_v1 }
   0x4   :  { %16 = vst.msk [vmem:[%s148_s2] sm:$0xf] %vm14_vm1, %v90_v24 }
   0x8   :  { %v68_v29 = vld [vmem:[%s147_s1] sm:$0xf] }
   0x9   :  { %v22_v4 = vld.sshfl [vmem:[#allocation1] sm:$0xff pattern:$0x75316420]  ;;  %v23_v5 = vld.sshfl [vmem:[#allocation1 + $0x8] sm:$0xff pattern:$0x75316420] }
   0xa   :  { %v33_v6 = vsel %vm32_vm0, %v22_v4, 0.0  ;;  %v34_v7 = vsel %vm32_vm0, %v23_v5, 0.0  ;;  %47 = vst [vmem:[#allocation1] ss:$2 sm:$0xff] %v43_v2 }
   0xb   :  { %v35_v8 = vadd.f32 %v34_v7, %v33_v6  ;;  %v26_v9 = vld.sshfl [vmem:[#allocation1 + $0x10] sm:$0xff pattern:$0x75316420]  ;;  %v27_v10 = vld.sshfl [vmem:[#allocation1 + $0x18] sm:$0xff pattern:$0x75316420] }
   0xc   :  { %51 = vst [vmem:[#allocation1 + $0x10] ss:$2 sm:$0xff] %v44_v3  ;;  %v38_v11 = vsel %vm32_vm0, %v26_v9, 0.0  ;;  %v39_v12 = vsel %vm32_vm0, %v27_v10, 0.0  ;;  %v75_v35 = vld [vmem:[%s148_s2] sm:$0xf] }
   0xd   :  { %36 = vadd.xlane.f32.xlu0 %v35_v8  ;;  %v40_v15 = vadd.f32 %v39_v12, %v38_v11 }
  0x11   :  { %v48_v13 = vld.sshfl [vmem:[#allocation1] sm:$0xff pattern:$0x75316420]  ;;  %v49_v14 = vld.sshfl [vmem:[#allocation1 + $0x8] sm:$0xff pattern:$0x75316420] }
  0x12   :  { %v58_v16 = vsel %vm32_vm0, %v48_v13, 0.0  ;;  %v59_v17 = vsel %vm32_vm0, %v49_v14, 0.0 }
  0x13   :  { %v60_v18 = vadd.f32 %v59_v17, %v58_v16  ;;  %v52_v19 = vld.sshfl [vmem:[#allocation1 + $0x10] sm:$0xff pattern:$0x75316420]  ;;  %v53_v20 = vld.sshfl [vmem:[#allocation1 + $0x18] sm:$0xff pattern:$0x75316420] }
  0x14   :  { %v63_v21 = vsel %vm32_vm0, %v52_v19, 0.0  ;;  %v64_v22 = vsel %vm32_vm0, %v53_v20, 0.0 }
  0x15   :  { %61 = vadd.xlane.f32.xlu1 %v60_v18  ;;  %41 = vadd.xlane.f32.xlu0 %v40_v15  ;;  %v65_v23 = vadd.f32 %v64_v22, %v63_v21 }
  0x1d   :  { %66 = vadd.xlane.f32.xlu1 %v65_v23 }
  0x80   :  { %v37_v25 = vpop.xlane.xlu0 %36 }
  0x81   :  { %v69_v26 = vsel %vm32_vm0, %v37_v25, 0.0 }
  0x88   :  { %v62_v27 = vpop.xlane.xlu1 %61  ;;  %v42_v28 = vpop.xlane.xlu0 %41 }
  0x89   :  { %v70_v30 = vsel %vm32_vm0, %v42_v28, 0.0  ;;  %v76_v34 = vsel %vm32_vm0, %v62_v27, 0.0 }
  0x8a   :  { %v71_v31 = vadd.f32 %v70_v30, %v69_v26 }
  0x8c   :  { %v72_v32 = vadd.f32 %v71_v31, %v68_v29 }
  0x8e   :  { %74 = vst.msk [vmem:[%s147_s1] sm:$0xf] %vm14_vm1, %v72_v32 }
  0x90   :  { %v67_v33 = vpop.xlane.xlu1 %66 }
  0x91   :  { %v77_v36 = vsel %vm32_vm0, %v67_v33, 0.0 }
  0x92   :  { %v78_v37 = vadd.f32 %v77_v36, %v76_v34 }
  0x94   :  { %v79_v38 = vadd.f32 %v78_v37, %v75_v35 }
  0x96   :  { %80 = vst.msk [vmem:[%s148_s2] sm:$0xf] %vm14_vm1, %v79_v38 }

// kernel: batchlayer_forward.3
= control target key start
LH: loop header
LB: loop body
LE: loop exit
PB: predicated region body
PF: predicated region fallthrough
CT: control target
= control target key end

     0   :  { %v49_v0 = vmov 0   ;;  %v50_v3 = vmov 839922192   ;;  %s89_s1 = inlined_call_operand.vmem [shape: f32[4,1], index: 1, kind: input, shape index: {}]   ;;  %s90_s2 = inlined_call_operand.vmem [shape: f32[4,1], index: 2, kind: input, shape index: {}]   ;;  %s91_s0 = inlined_call_operand.vmem [shape: f32[2,4,256], index: 0, kind: input, shape index: {}]   ;;  %s92_s3 = inlined_call_operand.vmem [shape: f32[2,4,256], index: 3, kind: output, shape index: {}]  }
   0x1   :  { %48 = vset.pattern.permute.xlu0 %v49_v0  ;;  %v16_v1 = vld [vmem:[%s89_s1] sm:$0xf]  ;;  %v23_v4 = vunpack.c.l.s4 %v50_v3  ;;  %v15_v9 = vld [vmem:[%s91_s0 + $0x8] sm:$0xff] }
   0x2   :  { %20 = vperm.xlu0 %48, %v16_v1   ;;  %v17_v2 = vld [vmem:[%s90_s2] sm:$0xf] }
   0x3   :  { %v24_v6 = vunpack.c.0.s8 %v23_v4  ;;  %v14_v8 = vld [vmem:[%s91_s0] sm:$0xff] }
   0xa   :  { %31 = vperm.xlu0 %48, %v17_v2  }
  0x74   :  { %v21_v5 = vpop.permute.xlu0 %20 }
  0x75   :  { %v25_v7 = vperm.slane %v21_v5, %v24_v6 }
  0x77   :  { %v27_v11 = vmul.f32 %v25_v7, %v14_v8  ;;  %v28_v12 = vmul.f32 %v25_v7, %v15_v9 }
  0x7c   :  { %v32_v10 = vpop.permute.xlu0 %31 }
  0x7d   :  { %v36_v13 = vperm.slane %v32_v10, %v24_v6 }
  0x7f   :  { %v38_v14 = vadd.f32 %v36_v13, %v27_v11  ;;  %v39_v15 = vadd.f32 %v36_v13, %v28_v12 }
  0x81   :  { %40 = vst [vmem:[%s92_s3] sm:$0xff] %v38_v14 }
  0x82   :  { %41 = vst [vmem:[%s92_s3 + $0x8] sm:$0xff] %v39_v15 }

</bundles_post_ra>
